<compile_context>
chip_gen: v5e
topology: v5e:2x2
jax: 0.10.0
libtpu: 0.0.40
codegen_flags: <defaults>
</compile_context>

<pallas_src>
import functools

import jax
import jax.numpy as jnp
from jax.experimental import pallas as pl
from jax.experimental.pallas import tpu as pltpu


def _round_up(x: int, m: int) -> int:
    return ((x + m - 1) // m) * m


def _vmem_cap_bytes() -> int:
    """Physical VMEM per TensorCore; falls back to the v7x 64 MiB minimum."""
    try:
        info = pltpu.get_tpu_info()
        for attr in ("vmem_capacity_bytes", "vmem_size_bytes", "vmem_bytes"):
            v = getattr(info, attr, None)
            if v:
                return int(v)
    except Exception:
        pass
    return 64 * 1024 * 1024


def _choose_batch_tile(batch: int, block_batch: int):
    """Pick (tm, padded_batch): tm multiple of 8, >= 2 grid steps when possible
    (v7x megacore), small tail padding for unlucky batch sizes."""
    block_batch = max(8, _round_up(block_batch, 8))
    b8 = _round_up(max(batch, 1), 8)
    if b8 <= 8:
        return 8, 8
    if b8 <= 2 * block_batch:
        # Two roughly equal tiles so the 'parallel' batch axis can shard across
        # both v7x TensorCores; adds at most 8 padded rows.
        tm = _round_up((b8 + 1) // 2, 8)
        return tm, 2 * tm
    # Large batch: biggest tile <= block_batch keeping tail padding under ~10%.
    best = None
    for cand in (block_batch, block_batch // 2, 512, 384, 256, 128, 64, 32, 16, 8):
        tm = max(8, _round_up(min(cand, block_batch), 8))
        bp = _round_up(b8, tm)
        waste = (bp - batch) / batch
        if waste <= 0.10:
            return tm, bp
        if best is None or (waste, -tm) < (best[2], -best[0]):
            best = (tm, bp, waste)
    return best[0], best[1]


# ----------------------------- Pallas kernel ------------------------------ #

def _mlp_kernel(x_ref, w1_ref, b1_ref, w2_ref, b2_ref, w3_ref, b3_ref, o_ref,
                *, activation: str):
    """One batch tile of the 3-layer MLP (matmuls + bias + activation)."""

    def act(h):
        if activation == "relu":
            return jnp.maximum(h, 0.0)
        if activation == "tanh":
            return jnp.tanh(h)
        if activation == "sigmoid":
            return jax.nn.sigmoid(h)
        raise ValueError(activation)

    cdt = w1_ref.dtype  # MXU input dtype (bf16 by default); accumulate in f32.
    # x is already streamed in the compute dtype -> no in-kernel cast.
    h = jnp.dot(x_ref[...], w1_ref[...], preferred_element_type=jnp.float32) + b1_ref[...]
    h = act(h)                                   # bias + activation kept in f32 (v5e-safe)
    h = jnp.dot(h.astype(cdt), w2_ref[...], preferred_element_type=jnp.float32) + b2_ref[...]
    h = act(h)
    y = jnp.dot(h.astype(cdt), w3_ref[...], preferred_element_type=jnp.float32) + b3_ref[...]
    o_ref[...] = y.astype(o_ref.dtype)
    # TODO(synk): on v6e/v7x (bf16 VALU/EUP) the bias+activation path could stay
    # in bf16 to cut VPU traffic; kept in f32 here for v5e-safe numerics.


def mlp_forward(x, w1, b1, w2, b2, w3, b3, *, activation: str, block_batch: int = 1024):
    """x: (B, D_in) in the weight compute dtype, D_in a multiple of 128.

    Weights: (D_in, H1), (H1, H2), (H2, D_out); biases (1, H) f32.
    All feature dims are multiples of 128. Returns (B, D_out) f32.
    """
    B, D_in = x.shape
    H1 = w1.shape[1]
    H2 = w2.shape[1]
    D_out = w3.shape[1]

    tm, Bp = _choose_batch_tile(B, block_batch)
    if Bp != B:
        x = jnp.pad(x, ((0, Bp - B), (0, 0)))
    grid = (Bp // tm,)

    param_bytes = sum(int(a.size) * a.dtype.itemsize for a in (w1, b1, w2, b2, w3, b3))

    # VMEM budget: double-buffered x tile + double-buffered out tile +
    # (conservatively double-buffered) resident params + f32 intermediates and
    # their narrow-dtype casts, with ~1.5x headroom.
    tile_budget = (
        2 * tm * D_in * x.dtype.itemsize
        + 2 * tm * D_out * 4
        + 2 * param_bytes
        + tm * (H1 + H2) * (4 + w1.dtype.itemsize)
    )
    vmem_limit = min(max(int(1.5 * tile_budget) + (2 << 20), 32 << 20),
                     int(0.9 * _vmem_cap_bytes()))

    # Advisory cost estimate for XLA's scheduler.
    flops = 2 * Bp * (D_in * H1 + H1 * H2 + H2 * D_out)
    transcendentals = 0 if activation == "relu" else Bp * (H1 + H2)
    bytes_accessed = Bp * D_in * x.dtype.itemsize + Bp * D_out * 4 + param_bytes

    def build_and_call(single_buffer_weights: bool):
        if single_buffer_weights:
            # Constant index_map -> one buffer is enough; frees VMEM for bigger tiles.
            resident = lambda a: pl.BlockSpec(a.shape, lambda i: (0, 0),
                                              pipeline_mode=pl.Buffered(1))
        else:
            resident = lambda a: pl.BlockSpec(a.shape, lambda i: (0, 0))

        call = pl.pallas_call(
            functools.partial(_mlp_kernel, activation=activation),
            out_shape=jax.ShapeDtypeStruct((Bp, D_out), jnp.float32),
            grid_spec=pl.GridSpec(
                grid=grid,
                in_specs=[
                    # TODO(synk): sweep pipeline_mode=pl.Buffered(3) on this spec for
                    # v7x if the trace shows exposed x DMA between grid steps.
                    pl.BlockSpec((tm, D_in), lambda i: (i, 0)),   # streamed per tile
                    resident(w1), resident(b1),
                    resident(w2), resident(b2),
                    resident(w3), resident(b3),
                ],
                out_specs=pl.BlockSpec((tm, D_out), lambda i: (i, 0)),
            ),
            compiler_params=pltpu.CompilerParams(
                dimension_semantics=("parallel",),          # megacore sharding on v7x
                vmem_limit_bytes=int(vmem_limit)),
            cost_estimate=pl.CostEstimate(
                flops=int(flops),
                transcendentals=int(transcendentals),
                bytes_accessed=int(bytes_accessed)),
        )
        return call(x, w1, b1, w2, b2, w3, b3)

    try:
        out = build_and_call(single_buffer_weights=True)
    except Exception:
        # TODO(synk): this jax build rejected pl.Buffered(1); fall back to default
        # double-buffered resident weights (costs ~param_bytes of extra VMEM).
        out = build_and_call(single_buffer_weights=False)

    return out[:B]


# --------------------------- Model (glue in JAX) --------------------------- #

class FeedForwardBaselinePallas:
    def __init__(self, num_dofs, num_contact_bodies, history_len,
                 output_data_format, activation, stride, root_history_len,
                 hidden_dims=(512, 512), key=None, param_dtype=jnp.bfloat16):
        self.stride = stride
        self.activation = activation
        self.num_dofs = num_dofs
        self.num_contact_bodies = num_contact_bodies
        self.history_len = history_len
        # Kept for interface parity; the reference module's asserts tie the root
        # history feature width to `stride`, not root_history_len.
        self.root_history_len = root_history_len
        self.param_dtype = param_dtype

        self.input_size = (3 * num_dofs + 4 * 3 + 2 * stride * 3 + 12 * 3) * (history_len // stride)
        self.num_output_frames = history_len // stride if output_data_format == "all_frames" else 1
        self.output_size = num_contact_bodies * (3 * 3 + 6) * self.num_output_frames

        assert len(hidden_dims) == 2, "kernel implements the default 2-hidden-layer MLP"
        dims = [self.input_size] + list(hidden_dims) + [self.output_size]
        # Lane-padded dims (multiples of 128) for MXU/layout friendliness.
        self.padded_dims = [_round_up(d, 128) for d in dims]

        # Deterministic parameter init (PyTorch Linear-style uniform bounds),
        # computed at the *true* sizes, then zero-padded and cast.
        if key is None:
            key = jax.random.PRNGKey(0)
        self.params = []
        for (h0, h1), (p0, p1) in zip(zip(dims[:-1], dims[1:]),
                                      zip(self.padded_dims[:-1], self.padded_dims[1:])):
            key, kw, kb = jax.random.split(key, 3)
            bound = 1.0 / (h0 ** 0.5)
            w = jax.random.uniform(kw, (h0, h1), jnp.float32, -bound, bound)
            b = jax.random.uniform(kb, (1, h1), jnp.float32, -bound, bound)
            w = jnp.pad(w, ((0, p0 - h0), (0, p1 - h1))).astype(param_dtype)
            b = jnp.pad(b, ((0, 0), (0, p1 - h1)))                 # bias stays f32
            self.params.append((w, b))

    def _flatten_inputs(self, inputs: dict) -> jnp.ndarray:
        pos = inputs["pos"]
        assert pos.ndim == 3 and pos.shape[-1] == self.num_dofs
        assert inputs["vel"].shape[-1] == self.num_dofs
        assert inputs["acc"].shape[-1] == self.num_dofs
        assert inputs["joint_centers_in_root_frame"].shape[-1] == 12 * 3
        assert inputs["root_pos_history_in_root_frame"].shape[-1] == self.stride * 3
        assert inputs["root_euler_history_in_root_frame"].shape[-1] == self.stride * 3

        # TODO(synk): for very large batches, pass the 10 segments as separate
        # kernel inputs (own batch-tiled BlockSpecs) and assemble the x tile
        # inside the kernel to avoid this HBM round-trip on x entirely.
        x = jnp.concatenate([
            inputs["pos"],
            inputs["vel"],
            inputs["acc"],
            inputs["root_linear_vel_in_root_frame"],
            inputs["root_angular_vel_in_root_frame"],
            inputs["root_linear_acc_in_root_frame"],
            inputs["root_angular_acc_in_root_frame"],
            inputs["joint_centers_in_root_frame"],
            inputs["root_pos_history_in_root_frame"],
            inputs["root_euler_history_in_root_frame"],
        ], axis=-1).reshape((pos.shape[0], -1)).astype(self.param_dtype)  # cast fused into concat
        assert x.shape[1] == self.input_size
        # Zero-pad the feature dim to the lane-padded input width.
        d_in_pad = self.padded_dims[0]
        if d_in_pad != self.input_size:
            x = jnp.pad(x, ((0, 0), (0, d_in_pad - self.input_size)))
        return x

    def forward(self, inputs: dict):
        x = self._flatten_inputs(inputs)
        batch_size = x.shape[0]
        (w1, b1), (w2, b2), (w3, b3) = self.params
        y_full = mlp_forward(x, w1, b1, w2, b2, w3, b3, activation=self.activation)
        y = y_full[:, :self.output_size]     # drop lane padding

        nf = self.num_output_frames
        return {
            "ground_contact_cops_in_root_frame":
                y[:, 0 * nf: 6 * nf].reshape((batch_size, nf, 6)),
            "ground_contact_forces_in_root_frame":
                y[:, 6 * nf:12 * nf].reshape((batch_size, nf, 6)),
            "ground_contact_torques_in_root_frame":
                y[:, 12 * nf:18 * nf].reshape((batch_size, nf, 6)),
            "ground_contact_wrenches_in_root_frame":
                y[:, 18 * nf:30 * nf].reshape((batch_size, nf, 12)),
        }


# ------------------------------- Reference -------------------------------- #

def _reference_mlp(x_padded, params, activation):
    """Plain-JAX reference with the same padded params and compute-dtype casts."""
    act = {"relu": jax.nn.relu, "tanh": jnp.tanh, "sigmoid": jax.nn.sigmoid}[activation]
    (w1, b1), (w2, b2), (w3, b3) = params
    cdt = w1.dtype
    h = act(jnp.dot(x_padded.astype(cdt), w1, preferred_element_type=jnp.float32) + b1)
    h = act(jnp.dot(h.astype(cdt), w2, preferred_element_type=jnp.float32) + b2)
    return jnp.dot(h.astype(cdt), w3, preferred_element_type=jnp.float32) + b3


def _split_outputs(y, batch, nf):
    return {
        "ground_contact_cops_in_root_frame": y[:, 0 * nf: 6 * nf].reshape((batch, nf, 6)),
        "ground_contact_forces_in_root_frame": y[:, 6 * nf:12 * nf].reshape((batch, nf, 6)),
        "ground_contact_torques_in_root_frame": y[:, 12 * nf:18 * nf].reshape((batch, nf, 6)),
        "ground_contact_wrenches_in_root_frame": y[:, 18 * nf:30 * nf].reshape((batch, nf, 12)),
    }


# --------------------------------- Main ------------------------------------ #

if __name__ == "__main__":
    # Small, consistent config.
    num_dofs = 4
    num_contact_bodies = 2          # matches the 30*num_output_frames output split
    history_len = 8
    stride = 2
    root_history_len = stride
    num_frames = history_len // stride   # 4
    batch = 2

    common = dict(
        num_dofs=num_dofs,
        num_contact_bodies=num_contact_bodies,
        history_len=history_len,
        output_data_format="all_frames",
        activation="relu",
        stride=stride,
        root_history_len=root_history_len,
        hidden_dims=(128, 128),
        key=jax.random.PRNGKey(42),
    )
    model = FeedForwardBaselinePallas(param_dtype=jnp.bfloat16, **common)
    model_f32 = FeedForwardBaselinePallas(param_dtype=jnp.float32, **common)

    key = jax.random.PRNGKey(0)

    def rnd(shape):
        global key
        key, sub = jax.random.split(key)
        return jax.random.normal(sub, shape, jnp.float32)

    inputs = {
        "pos": rnd((batch, num_frames, num_dofs)),
        "vel": rnd((batch, num_frames, num_dofs)),
        "acc": rnd((batch, num_frames, num_dofs)),
        "root_linear_vel_in_root_frame": rnd((batch, num_frames, 3)),
        "root_angular_vel_in_root_frame": rnd((batch, num_frames, 3)),
        "root_linear_acc_in_root_frame": rnd((batch, num_frames, 3)),
        "root_angular_acc_in_root_frame": rnd((batch, num_frames, 3)),
        "joint_centers_in_root_frame": rnd((batch, num_frames, 12 * 3)),
        "root_pos_history_in_root_frame": rnd((batch, num_frames, stride * 3)),
        "root_euler_history_in_root_frame": rnd((batch, num_frames, stride * 3)),
    }

    out = model.forward(inputs)
    out = jax.tree_util.tree_map(jax.block_until_ready, out)

    nf = model.num_output_frames

    # 1) bf16 kernel vs plain-JAX reference with the same bf16 padded params.
    x_pad = model._flatten_inputs(inputs)
    y_ref = _reference_mlp(x_pad, model.params, model.activation)[:, :model.output_size]
    ref = _split_outputs(y_ref, batch, nf)
    for k in ref:
        assert out[k].shape == ref[k].shape, (k, out[k].shape, ref[k].shape)
        assert jnp.allclose(out[k], ref[k], atol=1e-2, rtol=1e-2), (
            k, float(jnp.max(jnp.abs(out[k] - ref[k]))))

    # 2) Tighter f32-weight sanity path (same kernel, f32 params/inputs).
    out32 = model_f32.forward(inputs)
    out32 = jax.tree_util.tree_map(jax.block_until_ready, out32)
    x_pad32 = model_f32._flatten_inputs(inputs)
    y_ref32 = _reference_mlp(x_pad32, model_f32.params, model_f32.activation)[:, :model_f32.output_size]
    ref32 = _split_outputs(y_ref32, batch, nf)
    for k in ref32:
        assert out32[k].shape == ref32[k].shape
        assert jnp.allclose(out32[k], ref32[k], atol=2e-3, rtol=2e-3), (
            k, float(jnp.max(jnp.abs(out32[k] - ref32[k]))))

    # Sanity on shapes.
    assert out["ground_contact_cops_in_root_frame"].shape == (batch, nf, 6)
    assert out["ground_contact_forces_in_root_frame"].shape == (batch, nf, 6)
    assert out["ground_contact_torques_in_root_frame"].shape == (batch, nf, 6)
    assert out["ground_contact_wrenches_in_root_frame"].shape == (batch, nf, 12)

    print("KERNEL_OK")
</pallas_src>

<mosaic_0001>
module attributes {stable_mosaic.version = 11 : i64} {
  func.func @_mlp_kernel(%arg0: i32, %arg1: memref<8x384xbf16, #tpu.memory_space<vmem>>, %arg2: memref<384x128xbf16, #tpu.memory_space<vmem>>, %arg3: memref<1x128xf32, #tpu.memory_space<vmem>>, %arg4: memref<128x128xbf16, #tpu.memory_space<vmem>>, %arg5: memref<1x128xf32, #tpu.memory_space<vmem>>, %arg6: memref<128x128xbf16, #tpu.memory_space<vmem>>, %arg7: memref<1x128xf32, #tpu.memory_space<vmem>>, %arg8: memref<8x128xf32, #tpu.memory_space<vmem>>) attributes {dimension_semantics = [#tpu.dimension_semantics<parallel>], iteration_bounds = array<i64: 1>, scalar_prefetch = 0 : i64, scratch_operands = 0 : i64, tpu.core_type = #tpu.core_type<tc>, window_params = [{transform_indices = @transform_0, window_bounds = array<i64: 8, 384>}, {pipeline_mode = #tpu.pipeline_mode<synchronous>, transform_indices = @transform_1, window_bounds = array<i64: 384, 128>}, {pipeline_mode = #tpu.pipeline_mode<synchronous>, transform_indices = @transform_2, window_bounds = array<i64: 1, 128>}, {pipeline_mode = #tpu.pipeline_mode<synchronous>, transform_indices = @transform_3, window_bounds = array<i64: 128, 128>}, {pipeline_mode = #tpu.pipeline_mode<synchronous>, transform_indices = @transform_4, window_bounds = array<i64: 1, 128>}, {pipeline_mode = #tpu.pipeline_mode<synchronous>, transform_indices = @transform_5, window_bounds = array<i64: 128, 128>}, {pipeline_mode = #tpu.pipeline_mode<synchronous>, transform_indices = @transform_6, window_bounds = array<i64: 1, 128>}, {transform_indices = @transform_7, window_bounds = array<i64: 8, 128>}]} {
    %c0 = arith.constant 0 : index
    %c0_0 = arith.constant 0 : index
    %0 = vector.load %arg1[%c0, %c0_0] : memref<8x384xbf16, #tpu.memory_space<vmem>>, vector<8x384xbf16>
    %c0_1 = arith.constant 0 : index
    %c0_2 = arith.constant 0 : index
    %1 = vector.load %arg2[%c0_1, %c0_2] : memref<384x128xbf16, #tpu.memory_space<vmem>>, vector<384x128xbf16>
    %cst = arith.constant dense<0.000000e+00> : vector<8x128xf32>
    %2 = tpu.matmul %0, %1, %cst {dimension_numbers = #tpu.dot_dimension_numbers<[1], [0], [0], [1], [0, 0, 1, 1], [], []>} : vector<8x384xbf16>, vector<384x128xbf16>, vector<8x128xf32> -> vector<8x128xf32>
    %c0_3 = arith.constant 0 : index
    %c0_4 = arith.constant 0 : index
    %3 = vector.load %arg3[%c0_3, %c0_4] : memref<1x128xf32, #tpu.memory_space<vmem>>, vector<1x128xf32>
    %4 = vector.broadcast %3 : vector<1x128xf32> to vector<8x128xf32>
    %5 = arith.addf %2, %4 : vector<8x128xf32>
    %cst_5 = arith.constant 0.000000e+00 : f32
    %6 = vector.broadcast %cst_5 : f32 to vector<8x128xf32>
    %7 = arith.maximumf %5, %6 : vector<8x128xf32>
    %8 = arith.truncf %7 : vector<8x128xf32> to vector<8x128xbf16>
    %c0_6 = arith.constant 0 : index
    %c0_7 = arith.constant 0 : index
    %9 = vector.load %arg4[%c0_6, %c0_7] : memref<128x128xbf16, #tpu.memory_space<vmem>>, vector<128x128xbf16>
    %cst_8 = arith.constant dense<0.000000e+00> : vector<8x128xf32>
    %10 = tpu.matmul %8, %9, %cst_8 {dimension_numbers = #tpu.dot_dimension_numbers<[1], [0], [0], [1], [0, 0, 1, 1], [], []>} : vector<8x128xbf16>, vector<128x128xbf16>, vector<8x128xf32> -> vector<8x128xf32>
    %c0_9 = arith.constant 0 : index
    %c0_10 = arith.constant 0 : index
    %11 = vector.load %arg5[%c0_9, %c0_10] : memref<1x128xf32, #tpu.memory_space<vmem>>, vector<1x128xf32>
    %12 = vector.broadcast %11 : vector<1x128xf32> to vector<8x128xf32>
    %13 = arith.addf %10, %12 : vector<8x128xf32>
    %cst_11 = arith.constant 0.000000e+00 : f32
    %14 = vector.broadcast %cst_11 : f32 to vector<8x128xf32>
    %15 = arith.maximumf %13, %14 : vector<8x128xf32>
    %16 = arith.truncf %15 : vector<8x128xf32> to vector<8x128xbf16>
    %c0_12 = arith.constant 0 : index
    %c0_13 = arith.constant 0 : index
    %17 = vector.load %arg6[%c0_12, %c0_13] : memref<128x128xbf16, #tpu.memory_space<vmem>>, vector<128x128xbf16>
    %cst_14 = arith.constant dense<0.000000e+00> : vector<8x128xf32>
    %18 = tpu.matmul %16, %17, %cst_14 {dimension_numbers = #tpu.dot_dimension_numbers<[1], [0], [0], [1], [0, 0, 1, 1], [], []>} : vector<8x128xbf16>, vector<128x128xbf16>, vector<8x128xf32> -> vector<8x128xf32>
    %c0_15 = arith.constant 0 : index
    %c0_16 = arith.constant 0 : index
    %19 = vector.load %arg7[%c0_15, %c0_16] : memref<1x128xf32, #tpu.memory_space<vmem>>, vector<1x128xf32>
    %20 = vector.broadcast %19 : vector<1x128xf32> to vector<8x128xf32>
    %21 = arith.addf %18, %20 : vector<8x128xf32>
    %c0_17 = arith.constant 0 : index
    %c0_18 = arith.constant 0 : index
    %22 = vector.load %arg8[%c0_17, %c0_18] : memref<8x128xf32, #tpu.memory_space<vmem>>, vector<8x128xf32>
    tpu.vector_store %arg8[%c0_17, %c0_18], %21 {strides = array<i32>} : memref<8x128xf32, #tpu.memory_space<vmem>>, vector<8x128xf32>,
    return
  }
  func.func @transform_0(%arg0: i32) -> (i32, i32) {
    %c0_i32 = arith.constant 0 : i32
    %c0_i32_0 = arith.constant 0 : i32
    return %arg0, %c0_i32 : i32, i32
  }
  func.func @transform_1(%arg0: i32) -> (i32, i32) {
    %c0_i32 = arith.constant 0 : i32
    %c0_i32_0 = arith.constant 0 : i32
    %c0_i32_1 = arith.constant 0 : i32
    return %c0_i32, %c0_i32_0 : i32, i32
  }
  func.func @transform_2(%arg0: i32) -> (i32, i32) {
    %c0_i32 = arith.constant 0 : i32
    %c0_i32_0 = arith.constant 0 : i32
    %c0_i32_1 = arith.constant 0 : i32
    return %c0_i32, %c0_i32_0 : i32, i32
  }
  func.func @transform_3(%arg0: i32) -> (i32, i32) {
    %c0_i32 = arith.constant 0 : i32
    %c0_i32_0 = arith.constant 0 : i32
    %c0_i32_1 = arith.constant 0 : i32
    return %c0_i32, %c0_i32_0 : i32, i32
  }
  func.func @transform_4(%arg0: i32) -> (i32, i32) {
    %c0_i32 = arith.constant 0 : i32
    %c0_i32_0 = arith.constant 0 : i32
    %c0_i32_1 = arith.constant 0 : i32
    return %c0_i32, %c0_i32_0 : i32, i32
  }
  func.func @transform_5(%arg0: i32) -> (i32, i32) {
    %c0_i32 = arith.constant 0 : i32
    %c0_i32_0 = arith.constant 0 : i32
    %c0_i32_1 = arith.constant 0 : i32
    return %c0_i32, %c0_i32_0 : i32, i32
  }
  func.func @transform_6(%arg0: i32) -> (i32, i32) {
    %c0_i32 = arith.constant 0 : i32
    %c0_i32_0 = arith.constant 0 : i32
    %c0_i32_1 = arith.constant 0 : i32
    return %c0_i32, %c0_i32_0 : i32, i32
  }
  func.func @transform_7(%arg0: i32) -> (i32, i32) {
    %c0_i32 = arith.constant 0 : i32
    %c0_i32_0 = arith.constant 0 : i32
    return %arg0, %c0_i32 : i32, i32
  }
}

module attributes {stable_mosaic.version = 11 : i64} {
  func.func @_mlp_kernel(%arg0: i32, %arg1: memref<8x384xbf16, #tpu.memory_space<vmem>>, %arg2: memref<384x128xbf16, #tpu.memory_space<vmem>>, %arg3: memref<1x128xf32, #tpu.memory_space<vmem>>, %arg4: memref<128x128xbf16, #tpu.memory_space<vmem>>, %arg5: memref<1x128xf32, #tpu.memory_space<vmem>>, %arg6: memref<128x128xbf16, #tpu.memory_space<vmem>>, %arg7: memref<1x128xf32, #tpu.memory_space<vmem>>, %arg8: memref<8x128xf32, #tpu.memory_space<vmem>>) attributes {dimension_semantics = [#tpu.dimension_semantics<parallel>], iteration_bounds = array<i64: 1>, scalar_prefetch = 0 : i64, scratch_operands = 0 : i64, tpu.core_type = #tpu.core_type<tc>, window_params = [{transform_indices = @transform_0, window_bounds = array<i64: 8, 384>}, {pipeline_mode = #tpu.pipeline_mode<synchronous>, transform_indices = @transform_1, window_bounds = array<i64: 384, 128>}, {pipeline_mode = #tpu.pipeline_mode<synchronous>, transform_indices = @transform_2, window_bounds = array<i64: 1, 128>}, {pipeline_mode = #tpu.pipeline_mode<synchronous>, transform_indices = @transform_3, window_bounds = array<i64: 128, 128>}, {pipeline_mode = #tpu.pipeline_mode<synchronous>, transform_indices = @transform_4, window_bounds = array<i64: 1, 128>}, {pipeline_mode = #tpu.pipeline_mode<synchronous>, transform_indices = @transform_5, window_bounds = array<i64: 128, 128>}, {pipeline_mode = #tpu.pipeline_mode<synchronous>, transform_indices = @transform_6, window_bounds = array<i64: 1, 128>}, {transform_indices = @transform_7, window_bounds = array<i64: 8, 128>}]} {
    %c0 = arith.constant 0 : index
    %c0_0 = arith.constant 0 : index
    %0 = vector.load %arg1[%c0, %c0_0] : memref<8x384xbf16, #tpu.memory_space<vmem>>, vector<8x384xbf16>
    %c0_1 = arith.constant 0 : index
    %c0_2 = arith.constant 0 : index
    %1 = vector.load %arg2[%c0_1, %c0_2] : memref<384x128xbf16, #tpu.memory_space<vmem>>, vector<384x128xbf16>
    %cst = arith.constant dense<0.000000e+00> : vector<8x128xf32>
    %2 = tpu.matmul %0, %1, %cst {dimension_numbers = #tpu.dot_dimension_numbers<[1], [0], [0], [1], [0, 0, 1, 1], [], []>} : vector<8x384xbf16>, vector<384x128xbf16>, vector<8x128xf32> -> vector<8x128xf32>
    %c0_3 = arith.constant 0 : index
    %c0_4 = arith.constant 0 : index
    %3 = vector.load %arg3[%c0_3, %c0_4] : memref<1x128xf32, #tpu.memory_space<vmem>>, vector<1x128xf32>
    %4 = vector.broadcast %3 : vector<1x128xf32> to vector<8x128xf32>
    %5 = arith.addf %2, %4 : vector<8x128xf32>
    %cst_5 = arith.constant 0.000000e+00 : f32
    %6 = vector.broadcast %cst_5 : f32 to vector<8x128xf32>
    %7 = arith.maximumf %5, %6 : vector<8x128xf32>
    %8 = arith.truncf %7 : vector<8x128xf32> to vector<8x128xbf16>
    %c0_6 = arith.constant 0 : index
    %c0_7 = arith.constant 0 : index
    %9 = vector.load %arg4[%c0_6, %c0_7] : memref<128x128xbf16, #tpu.memory_space<vmem>>, vector<128x128xbf16>
    %cst_8 = arith.constant dense<0.000000e+00> : vector<8x128xf32>
    %10 = tpu.matmul %8, %9, %cst_8 {dimension_numbers = #tpu.dot_dimension_numbers<[1], [0], [0], [1], [0, 0, 1, 1], [], []>} : vector<8x128xbf16>, vector<128x128xbf16>, vector<8x128xf32> -> vector<8x128xf32>
    %c0_9 = arith.constant 0 : index
    %c0_10 = arith.constant 0 : index
    %11 = vector.load %arg5[%c0_9, %c0_10] : memref<1x128xf32, #tpu.memory_space<vmem>>, vector<1x128xf32>
    %12 = vector.broadcast %11 : vector<1x128xf32> to vector<8x128xf32>
    %13 = arith.addf %10, %12 : vector<8x128xf32>
    %cst_11 = arith.constant 0.000000e+00 : f32
    %14 = vector.broadcast %cst_11 : f32 to vector<8x128xf32>
    %15 = arith.maximumf %13, %14 : vector<8x128xf32>
    %16 = arith.truncf %15 : vector<8x128xf32> to vector<8x128xbf16>
    %c0_12 = arith.constant 0 : index
    %c0_13 = arith.constant 0 : index
    %17 = vector.load %arg6[%c0_12, %c0_13] : memref<128x128xbf16, #tpu.memory_space<vmem>>, vector<128x128xbf16>
    %cst_14 = arith.constant dense<0.000000e+00> : vector<8x128xf32>
    %18 = tpu.matmul %16, %17, %cst_14 {dimension_numbers = #tpu.dot_dimension_numbers<[1], [0], [0], [1], [0, 0, 1, 1], [], []>} : vector<8x128xbf16>, vector<128x128xbf16>, vector<8x128xf32> -> vector<8x128xf32>
    %c0_15 = arith.constant 0 : index
    %c0_16 = arith.constant 0 : index
    %19 = vector.load %arg7[%c0_15, %c0_16] : memref<1x128xf32, #tpu.memory_space<vmem>>, vector<1x128xf32>
    %20 = vector.broadcast %19 : vector<1x128xf32> to vector<8x128xf32>
    %21 = arith.addf %18, %20 : vector<8x128xf32>
    %c0_17 = arith.constant 0 : index
    %c0_18 = arith.constant 0 : index
    %22 = vector.load %arg8[%c0_17, %c0_18] : memref<8x128xf32, #tpu.memory_space<vmem>>, vector<8x128xf32>
    tpu.vector_store %arg8[%c0_17, %c0_18], %21 {strides = array<i32>} : memref<8x128xf32, #tpu.memory_space<vmem>>, vector<8x128xf32>,
    return
  }
  func.func @transform_0(%arg0: i32) -> (i32, i32) {
    %c0_i32 = arith.constant 0 : i32
    %c0_i32_0 = arith.constant 0 : i32
    return %arg0, %c0_i32 : i32, i32
  }
  func.func @transform_1(%arg0: i32) -> (i32, i32) {
    %c0_i32 = arith.constant 0 : i32
    %c0_i32_0 = arith.constant 0 : i32
    %c0_i32_1 = arith.constant 0 : i32
    return %c0_i32, %c0_i32_0 : i32, i32
  }
  func.func @transform_2(%arg0: i32) -> (i32, i32) {
    %c0_i32 = arith.constant 0 : i32
    %c0_i32_0 = arith.constant 0 : i32
    %c0_i32_1 = arith.constant 0 : i32
    return %c0_i32, %c0_i32_0 : i32, i32
  }
  func.func @transform_3(%arg0: i32) -> (i32, i32) {
    %c0_i32 = arith.constant 0 : i32
    %c0_i32_0 = arith.constant 0 : i32
    %c0_i32_1 = arith.constant 0 : i32
    return %c0_i32, %c0_i32_0 : i32, i32
  }
  func.func @transform_4(%arg0: i32) -> (i32, i32) {
    %c0_i32 = arith.constant 0 : i32
    %c0_i32_0 = arith.constant 0 : i32
    %c0_i32_1 = arith.constant 0 : i32
    return %c0_i32, %c0_i32_0 : i32, i32
  }
  func.func @transform_5(%arg0: i32) -> (i32, i32) {
    %c0_i32 = arith.constant 0 : i32
    %c0_i32_0 = arith.constant 0 : i32
    %c0_i32_1 = arith.constant 0 : i32
    return %c0_i32, %c0_i32_0 : i32, i32
  }
  func.func @transform_6(%arg0: i32) -> (i32, i32) {
    %c0_i32 = arith.constant 0 : i32
    %c0_i32_0 = arith.constant 0 : i32
    %c0_i32_1 = arith.constant 0 : i32
    return %c0_i32, %c0_i32_0 : i32, i32
  }
  func.func @transform_7(%arg0: i32) -> (i32, i32) {
    %c0_i32 = arith.constant 0 : i32
    %c0_i32_0 = arith.constant 0 : i32
    return %arg0, %c0_i32 : i32, i32
  }
}

</mosaic_0001>

<bundles_post_ra>
// kernel: tpu_custom_call.1
= control target key start
LH: loop header
LB: loop body
LE: loop exit
PB: predicated region body
PF: predicated region fallthrough
CT: control target
= control target key end

     0   :  { %12 = vsyncpa [#allocation3], 0  ;;  %s931_s0 = inlined_call_operand.hbm [shape: bf16[8,384], index: 0, kind: input, shape index: {}]   ;;  %s932_s1 = inlined_call_operand.hbm [shape: bf16[384,128], index: 1, kind: input, shape index: {}]   ;;  %s933_s2 = inlined_call_operand.vmem [shape: f32[1,128], index: 2, kind: input, shape index: {}]   ;;  %s934_s3 = inlined_call_operand.hbm [shape: bf16[128,128], index: 3, kind: input, shape index: {}]   ;;  %s935_s4 = inlined_call_operand.vmem [shape: f32[1,128], index: 4, kind: input, shape index: {}]   ;;  %s936_s5 = inlined_call_operand.hbm [shape: bf16[128,128], index: 5, kind: input, shape index: {}]   ;;  %s937_s6 = inlined_call_operand.vmem [shape: f32[1,128], index: 6, kind: input, shape index: {}]   ;;  %s938_s7 = inlined_call_operand.hbm [shape: f32[8,128], index: 7, kind: output, shape index: {}]  }
   0x1   :  { %13 = vsyncpa [#allocation6], 0 }
   0x2   :  { %14 = vsyncpa [#allocation9], 0  ;;  %s31_s26 = sshll.u32 %s932_s1, 4  ;;  %s32_s26 = int_to_ptr.hbm [resolvable:$true] %s31_s26 }
   0x3   :  { %15 = vsyncpa [#allocation4], 0  ;;  %s860_s27 = smov [#allocation5]   ;;  %s21_s8 = sshll.u32 %s931_s0, 4  ;;  %s22_s8 = int_to_ptr.hbm [resolvable:$true] %s21_s8 }
   0x4   :  { %s33_s28 = sshll.u32 %s860_s27, 4  ;;  %s861_s9 = smov 64   ;;  %s34_s28 = int_to_ptr.vmem [resolvable:$true] %s33_s28 }
   0x5   :  { %s862_s10 = smov 4   ;;  %s863_s11 = smov [#allocation2]  }
   0x6   :  { %39 = dma.hbm_to_vmem [thread:$0]  %s32_s26, 3072, %s34_s28, [#allocation6], %s861_s9, %s861_s9, %s862_s10  }
   0x7   :  { %s23_s12 = sshll.u32 %s863_s11, 4  ;;  %s46_s15 = sshll.u32 %s934_s3, 4  ;;  %s24_s12 = int_to_ptr.vmem [resolvable:$true] %s23_s12  ;;  %s47_s15 = int_to_ptr.hbm [resolvable:$true] %s46_s15 }
   0x8   :  { %26 = dma.hbm_to_vmem [thread:$0]  %s22_s8, 192, %s24_s12, [#allocation3]  }
   0x9   :  { %s61_s17 = sshll.u32 %s936_s5, 4  ;;  %s864_s18 = smov [#allocation7]   ;;  %s62_s17 = int_to_ptr.hbm [resolvable:$true] %s61_s17 }
   0xa   :  { %s48_s19 = sshll.u32 %s864_s18, 4  ;;  %s865_s0 = smov [#allocation8]   ;;  %s49_s19 = int_to_ptr.vmem [resolvable:$true] %s48_s19 }
   0xb   :  { %54 = dma.hbm_to_vmem [thread:$0]  %s47_s15, 1024, %s49_s19, [#allocation6], %s861_s9, %s861_s9, %s862_s10  }
   0xc   :  { %s63_s20 = sshll.u32 %s865_s0, 4  ;;  %s64_s20 = int_to_ptr.vmem [resolvable:$true] %s63_s20 }
   0xd   :  { %69 = dma.hbm_to_vmem [thread:$0]  %s62_s17, 1024, %s64_s20, [#allocation9], %s861_s9, %s861_s9, %s862_s10  }
   0xe   :  { %852 = dma.done.wait [#allocation3], 192  }
   0xf   :  { %853 = vsyncadd [#allocation3], 4294967104 }
  0x10   :  { %854 = dma.done.wait [#allocation6], 4096  }
  0x11   :  { %855 = vsyncadd [#allocation6], 4294963200 }
  0x12   :  { %856 = dma.done.wait [#allocation9], 1024  }
  0x13   :  { %857 = vsyncadd [#allocation9], 4294966272  ;;  %v689_v0 = vld [vmem:[#allocation5 + $0x38] sm:$0xff]  ;;  %v688_v3 = vld [vmem:[#allocation5 + $0x30] sm:$0xff]  ;;  %s866_s24 = smov [#allocation10]   ;;  %s510_s28 = sshll.u32 %s938_s7, 4  ;;  %s511_s28 = int_to_ptr.hbm [resolvable:$true] %s510_s28 }
  0x14   :  { %v697_v1 = vld [vmem:[#allocation5 + $0x78] sm:$0xff]  ;;  %297 = vmatpush.bf16.msra.mxu0 %v689_v0  ;;  %v696_v4 = vld [vmem:[#allocation5 + $0x70] sm:$0xff]  ;;  %v687_v6 = vld [vmem:[#allocation5 + $0x28] sm:$0xff]  ;;  %s508_s25 = sshll.u32 %s866_s24, 4  ;;  %s509_s25 = int_to_ptr.vmem [resolvable:$true] %s508_s25 }
  0x15   :  { %v705_v2 = vld [vmem:[#allocation5 + $0xb8] sm:$0xff]  ;;  %310 = vmatpush.bf16.msra.mxu1 %v697_v1  ;;  %v704_v5 = vld [vmem:[#allocation5 + $0xb0] sm:$0xff]  ;;  %v695_v7 = vld [vmem:[#allocation5 + $0x68] sm:$0xff] }
  0x16   :  { %323 = vmatpush.bf16.msra.mxu2 %v705_v2  ;;  %v703_v8 = vld [vmem:[#allocation5 + $0xa8] sm:$0xff]  ;;  %v713_v9 = vld [vmem:[#allocation7 + $0x38] sm:$0xff]  ;;  %v686_v10 = vld [vmem:[#allocation5 + $0x20] sm:$0xff] }
  0x17   :  { %v694_v11 = vld [vmem:[#allocation5 + $0x60] sm:$0xff]  ;;  %406 = vmatpush.bf16.msra.mxu3 %v713_v9  ;;  %v712_v13 = vld [vmem:[#allocation7 + $0x30] sm:$0xff]  ;;  %v685_v14 = vld [vmem:[#allocation5 + $0x18] sm:$0xff] }
  0x18   :  { %298 = vmatpush.bf16.msra.mxu0 %v688_v3  ;;  %v702_v12 = vld [vmem:[#allocation5 + $0xa0] sm:$0xff]  ;;  %v693_v15 = vld [vmem:[#allocation5 + $0x58] sm:$0xff]  ;;  %v711_v17 = vld [vmem:[#allocation7 + $0x28] sm:$0xff] }
  0x19   :  { %311 = vmatpush.bf16.msra.mxu1 %v696_v4  ;;  %v701_v16 = vld [vmem:[#allocation5 + $0x98] sm:$0xff]  ;;  %v684_v18 = vld [vmem:[#allocation5 + $0x10] sm:$0xff]  ;;  %v710_v21 = vld [vmem:[#allocation7 + $0x20] sm:$0xff] }
  0x1a   :  { %324 = vmatpush.bf16.msra.mxu2 %v704_v5  ;;  %v692_v19 = vld [vmem:[#allocation5 + $0x50] sm:$0xff]  ;;  %v683_v22 = vld [vmem:[#allocation5 + $0x8] sm:$0xff]  ;;  %v89_v26 = vld [vmem:[#allocation2 + $0x8] sm:$0xf] }
  0x1b   :  { %407 = vmatpush.bf16.msra.mxu3 %v712_v13  ;;  %v700_v20 = vld [vmem:[#allocation5 + $0x90] sm:$0xff]  ;;  %v691_v23 = vld [vmem:[#allocation5 + $0x48] sm:$0xff]  ;;  %v709_v27 = vld [vmem:[#allocation7 + $0x18] sm:$0xff]  ;;  %v146_v32 = vunpack.c.l.b16 %v89_v26 }
  0x1c   :  { %299 = vmatpush.bf16.msra.mxu0 %v687_v6  ;;  %v88_v24 = vld [vmem:[#allocation2] sm:$0xff]  ;;  %v699_v25 = vld [vmem:[#allocation5 + $0x88] sm:$0xff]  ;;  %v682_v30 = vld [vmem:[#allocation5] sm:$0xff] }
  0x1d   :  { %312 = vmatpush.bf16.msra.mxu1 %v695_v7  ;;  %v144_v28 = vunpack.c.l.b16 %v88_v24  ;;  %v145_v29 = vunpack.c.h.b16 %v88_v24  ;;  %v690_v31 = vld [vmem:[#allocation5 + $0x40] sm:$0xff]  ;;  %v149_v36 = vpack.c.b16 %v146_v32, %v146_v32  ;;  %v708_v37 = vld [vmem:[#allocation7 + $0x10] sm:$0xff]  ;;  %v707_v38 = vld [vmem:[#allocation7 + $0x8] sm:$0xff] }
  0x1e   :  { %325 = vmatpush.bf16.msra.mxu2 %v703_v8  ;;  %v698_v33 = vld [vmem:[#allocation5 + $0x80] sm:$0xff]  ;;  %v721_v40 = vld [vmem:[#allocation8 + $0x38] sm:$0xff]  ;;  %v720_v41 = vld [vmem:[#allocation8 + $0x30] sm:$0xff] }
  0x1f   :  { %408 = vmatpush.bf16.msra.mxu3 %v711_v17  ;;  %v147_v34 = vpack.c.b16 %v144_v28, %v144_v28  ;;  %v148_v35 = vpack.c.b16 %v145_v29, %v145_v29  ;;  %v706_v39 = vld [vmem:[#allocation7] sm:$0xff]  ;;  %v719_v42 = vld [vmem:[#allocation8 + $0x28] sm:$0xff]  ;;  %v729_v44 = vld [vmem:[%s933_s2] ss:$0 sm:$0xff] }
  0x20   :  { %300 = vmatpush.bf16.msra.mxu0 %v686_v10  ;;  %v718_v43 = vld [vmem:[#allocation8 + $0x20] sm:$0xff]  ;;  %v717_v45 = vld [vmem:[#allocation8 + $0x18] sm:$0xff]  ;;  %v716_v49 = vld [vmem:[#allocation8 + $0x10] sm:$0xff] }
  0x21   :  { %313 = vmatpush.bf16.msra.mxu1 %v694_v11  ;;  %v715_v58 = vld [vmem:[#allocation8 + $0x8] sm:$0xff]  ;;  %v714_v59 = vld [vmem:[#allocation8] sm:$0xff]  ;;  %v730_v60 = vld [vmem:[%s935_s4] ss:$0 sm:$0xff] }
  0x22   :  { %326 = vmatpush.bf16.msra.mxu2 %v702_v12  ;;  %v731_v2 = vld [vmem:[%s937_s6] ss:$0 sm:$0xff] }
  0x23   :  { %409 = vmatpush.bf16.msra.mxu3 %v710_v21 }
  0x24   :  { %301 = vmatpush.bf16.msra.mxu0 %v685_v14 }
  0x25   :  { %314 = vmatpush.bf16.msra.mxu1 %v693_v15 }
  0x26   :  { %327 = vmatpush.bf16.msra.mxu2 %v701_v16 }
  0x27   :  { %410 = vmatpush.bf16.msra.mxu3 %v709_v27 }
  0x28   :  { %302 = vmatpush.bf16.msra.mxu0 %v684_v18 }
  0x29   :  { %315 = vmatpush.bf16.msra.mxu1 %v692_v19 }
  0x2a   :  { %328 = vmatpush.bf16.msra.mxu2 %v700_v20 }
  0x2b   :  { %411 = vmatpush.bf16.msra.mxu3 %v708_v37 }
  0x2c   :  { %303 = vmatpush.bf16.msra.mxu0 %v683_v22 }
  0x2d   :  { %316 = vmatpush.bf16.msra.mxu1 %v691_v23 }
  0x2e   :  { %329 = vmatpush.bf16.msra.mxu2 %v699_v25 }
  0x2f   :  { %412 = vmatpush.bf16.msra.mxu3 %v707_v38 }
  0x30   :  { %304 = vmatpush.bf16.msra.mxu0 %v682_v30 }
  0x31   :  { %317 = vmatpush.bf16.msra.mxu1 %v690_v31 }
  0x32   :  { %330 = vmatpush.bf16.msra.mxu2 %v698_v33 }
  0x33   :  { %305 = vmatmul.bf16.vlgmr.msra.gmra.mxu0 %v147_v34  ;;  %413 = vmatpush.bf16.msra.mxu3 %v706_v39 }
  0x34   :  { %318 = vmatmul.bf16.vlgmr.msra.gmra.mxu1 %v148_v35  ;;  %489 = vmatpush.bf16.msrb.mxu0 %v721_v40 }
  0x35   :  { %331 = vmatmul.bf16.vlgmr.msra.gmra.mxu2 %v149_v36 }
  0x38   :  { %490 = vmatpush.bf16.msrb.mxu0 %v720_v41 }
  0x3c   :  { %491 = vmatpush.bf16.msrb.mxu0 %v719_v42 }
  0x40   :  { %492 = vmatpush.bf16.msrb.mxu0 %v718_v43 }
  0x44   :  { %493 = vmatpush.bf16.msrb.mxu0 %v717_v45 }
  0x48   :  { %494 = vmatpush.bf16.msrb.mxu0 %v716_v49 }
  0x4c   :  { %495 = vmatpush.bf16.msrb.mxu0 %v715_v58 }
  0x50   :  { %496 = vmatpush.bf16.msrb.mxu0 %v714_v59 }
  0xb0   :  { %v306_v46 = vpop.f32.mrf.mxu0 }
  0xb1   :  { %v319_v47 = vpop.f32.mrf.mxu1  ;;  %v307_v48 = vadd.f32 %v729_v44, %v306_v46 }
  0xb3   :  { %v320_v50 = vadd.f32 %v319_v47, %v307_v48 }
  0xb8   :  { %v332_v51 = vpop.f32.mrf.mxu2  ;;  %v308_v53 = vpop.f32.mrf.mxu0 }
  0xb9   :  { %v333_v52 = vadd.f32 %v332_v51, %v320_v50  ;;  %v321_v54 = vpop.f32.mrf.mxu1 }
  0xbb   :  { %v336_v55 = vmax.f32 %v333_v52, 0.0 }
  0xbd   :  { %v337_v56 = vpack.c.bf16 %v336_v55, %v336_v55 }
  0xbf   :  { %414 = vmatmul.bf16.vlgmr.msra.gmra.mxu3 %v337_v56 }
  0xc0   :  { %v334_v57 = vpop.f32.mrf.mxu2 }
 0x142   :  { %v415_v61 = vpop.f32.mrf.mxu3 }
 0x143   :  { %v416_v62 = vadd.f32 %v730_v60, %v415_v61 }
 0x145   :  { %v419_v63 = vmax.f32 %v416_v62, 0.0 }
 0x147   :  { %v420_v0 = vpack.c.bf16 %v419_v63, %v419_v63 }
 0x149   :  { %497 = vmatmul.bf16.vlgmr.msrb.gmra.mxu0 %v420_v0 }
 0x14a   :  { %v417_v1 = vpop.f32.mrf.mxu3 }
 0x1c6   :  { %v498_v3 = vpop.f32.mrf.mxu0 }
 0x1c7   :  { %v499_v4 = vadd.f32 %v731_v2, %v498_v3 }
 0x1c9   :  { %502 = vst [vmem:[#allocation10] sm:$0xff] %v499_v4 }
 0x1ca   :  { %513 = dma.vmem_to_hbm [thread:$0]  %s509_s25, 128, %s511_s28, [#allocation4]  }
 0x1ce   :  { %v500_v5 = vpop.f32.mrf.mxu0 }
 0x1cf   :  { %858 = dma.done.wait [#allocation4], 128  }
 0x1d0   :  { %859 = vsyncadd [#allocation4], 4294967168 }
 0x1d1   :  { %518 = vsyncpa [#allocation3], 1 }
 0x1d2   :  { %519 = vsyncpa [#allocation6], 1 }
 0x1d3   :  { %520 = vsyncpa [#allocation9], 1 }
 0x1d4   :  { %521 = vsyncpa [#allocation4], 1 }

// kernel: tpu_custom_call.1
= control target key start
LH: loop header
LB: loop body
LE: loop exit
PB: predicated region body
PF: predicated region fallthrough
CT: control target
= control target key end

     0   :  { %12 = vsyncpa [#allocation3], 0  ;;  %s931_s0 = inlined_call_operand.hbm [shape: bf16[8,384], index: 0, kind: input, shape index: {}]   ;;  %s932_s1 = inlined_call_operand.hbm [shape: bf16[384,128], index: 1, kind: input, shape index: {}]   ;;  %s933_s2 = inlined_call_operand.vmem [shape: f32[1,128], index: 2, kind: input, shape index: {}]   ;;  %s934_s3 = inlined_call_operand.hbm [shape: bf16[128,128], index: 3, kind: input, shape index: {}]   ;;  %s935_s4 = inlined_call_operand.vmem [shape: f32[1,128], index: 4, kind: input, shape index: {}]   ;;  %s936_s5 = inlined_call_operand.hbm [shape: bf16[128,128], index: 5, kind: input, shape index: {}]   ;;  %s937_s6 = inlined_call_operand.vmem [shape: f32[1,128], index: 6, kind: input, shape index: {}]   ;;  %s938_s7 = inlined_call_operand.hbm [shape: f32[8,128], index: 7, kind: output, shape index: {}]  }
   0x1   :  { %13 = vsyncpa [#allocation6], 0 }
   0x2   :  { %14 = vsyncpa [#allocation9], 0  ;;  %s31_s26 = sshll.u32 %s932_s1, 4  ;;  %s32_s26 = int_to_ptr.hbm [resolvable:$true] %s31_s26 }
   0x3   :  { %15 = vsyncpa [#allocation4], 0  ;;  %s860_s27 = smov [#allocation5]   ;;  %s21_s8 = sshll.u32 %s931_s0, 4  ;;  %s22_s8 = int_to_ptr.hbm [resolvable:$true] %s21_s8 }
   0x4   :  { %s33_s28 = sshll.u32 %s860_s27, 4  ;;  %s861_s9 = smov 64   ;;  %s34_s28 = int_to_ptr.vmem [resolvable:$true] %s33_s28 }
   0x5   :  { %s862_s10 = smov 4   ;;  %s863_s11 = smov [#allocation2]  }
   0x6   :  { %39 = dma.hbm_to_vmem [thread:$0]  %s32_s26, 3072, %s34_s28, [#allocation6], %s861_s9, %s861_s9, %s862_s10  }
   0x7   :  { %s23_s12 = sshll.u32 %s863_s11, 4  ;;  %s46_s15 = sshll.u32 %s934_s3, 4  ;;  %s24_s12 = int_to_ptr.vmem [resolvable:$true] %s23_s12  ;;  %s47_s15 = int_to_ptr.hbm [resolvable:$true] %s46_s15 }
   0x8   :  { %26 = dma.hbm_to_vmem [thread:$0]  %s22_s8, 192, %s24_s12, [#allocation3]  }
   0x9   :  { %s61_s17 = sshll.u32 %s936_s5, 4  ;;  %s864_s18 = smov [#allocation7]   ;;  %s62_s17 = int_to_ptr.hbm [resolvable:$true] %s61_s17 }
   0xa   :  { %s48_s19 = sshll.u32 %s864_s18, 4  ;;  %s865_s0 = smov [#allocation8]   ;;  %s49_s19 = int_to_ptr.vmem [resolvable:$true] %s48_s19 }
   0xb   :  { %54 = dma.hbm_to_vmem [thread:$0]  %s47_s15, 1024, %s49_s19, [#allocation6], %s861_s9, %s861_s9, %s862_s10  }
   0xc   :  { %s63_s20 = sshll.u32 %s865_s0, 4  ;;  %s64_s20 = int_to_ptr.vmem [resolvable:$true] %s63_s20 }
   0xd   :  { %69 = dma.hbm_to_vmem [thread:$0]  %s62_s17, 1024, %s64_s20, [#allocation9], %s861_s9, %s861_s9, %s862_s10  }
   0xe   :  { %852 = dma.done.wait [#allocation3], 192  }
   0xf   :  { %853 = vsyncadd [#allocation3], 4294967104 }
  0x10   :  { %854 = dma.done.wait [#allocation6], 4096  }
  0x11   :  { %855 = vsyncadd [#allocation6], 4294963200 }
  0x12   :  { %856 = dma.done.wait [#allocation9], 1024  }
  0x13   :  { %857 = vsyncadd [#allocation9], 4294966272  ;;  %v689_v0 = vld [vmem:[#allocation5 + $0x38] sm:$0xff]  ;;  %v688_v3 = vld [vmem:[#allocation5 + $0x30] sm:$0xff]  ;;  %s866_s24 = smov [#allocation10]   ;;  %s510_s28 = sshll.u32 %s938_s7, 4  ;;  %s511_s28 = int_to_ptr.hbm [resolvable:$true] %s510_s28 }
  0x14   :  { %v697_v1 = vld [vmem:[#allocation5 + $0x78] sm:$0xff]  ;;  %297 = vmatpush.bf16.msra.mxu0 %v689_v0  ;;  %v696_v4 = vld [vmem:[#allocation5 + $0x70] sm:$0xff]  ;;  %v687_v6 = vld [vmem:[#allocation5 + $0x28] sm:$0xff]  ;;  %s508_s25 = sshll.u32 %s866_s24, 4  ;;  %s509_s25 = int_to_ptr.vmem [resolvable:$true] %s508_s25 }
  0x15   :  { %v705_v2 = vld [vmem:[#allocation5 + $0xb8] sm:$0xff]  ;;  %310 = vmatpush.bf16.msra.mxu1 %v697_v1  ;;  %v704_v5 = vld [vmem:[#allocation5 + $0xb0] sm:$0xff]  ;;  %v695_v7 = vld [vmem:[#allocation5 + $0x68] sm:$0xff] }
  0x16   :  { %323 = vmatpush.bf16.msra.mxu2 %v705_v2  ;;  %v703_v8 = vld [vmem:[#allocation5 + $0xa8] sm:$0xff]  ;;  %v713_v9 = vld [vmem:[#allocation7 + $0x38] sm:$0xff]  ;;  %v686_v10 = vld [vmem:[#allocation5 + $0x20] sm:$0xff] }
  0x17   :  { %v694_v11 = vld [vmem:[#allocation5 + $0x60] sm:$0xff]  ;;  %406 = vmatpush.bf16.msra.mxu3 %v713_v9  ;;  %v712_v13 = vld [vmem:[#allocation7 + $0x30] sm:$0xff]  ;;  %v685_v14 = vld [vmem:[#allocation5 + $0x18] sm:$0xff] }
  0x18   :  { %298 = vmatpush.bf16.msra.mxu0 %v688_v3  ;;  %v702_v12 = vld [vmem:[#allocation5 + $0xa0] sm:$0xff]  ;;  %v693_v15 = vld [vmem:[#allocation5 + $0x58] sm:$0xff]  ;;  %v711_v17 = vld [vmem:[#allocation7 + $0x28] sm:$0xff] }
  0x19   :  { %311 = vmatpush.bf16.msra.mxu1 %v696_v4  ;;  %v701_v16 = vld [vmem:[#allocation5 + $0x98] sm:$0xff]  ;;  %v684_v18 = vld [vmem:[#allocation5 + $0x10] sm:$0xff]  ;;  %v710_v21 = vld [vmem:[#allocation7 + $0x20] sm:$0xff] }
  0x1a   :  { %324 = vmatpush.bf16.msra.mxu2 %v704_v5  ;;  %v692_v19 = vld [vmem:[#allocation5 + $0x50] sm:$0xff]  ;;  %v683_v22 = vld [vmem:[#allocation5 + $0x8] sm:$0xff]  ;;  %v89_v26 = vld [vmem:[#allocation2 + $0x8] sm:$0xf] }
  0x1b   :  { %407 = vmatpush.bf16.msra.mxu3 %v712_v13  ;;  %v700_v20 = vld [vmem:[#allocation5 + $0x90] sm:$0xff]  ;;  %v691_v23 = vld [vmem:[#allocation5 + $0x48] sm:$0xff]  ;;  %v709_v27 = vld [vmem:[#allocation7 + $0x18] sm:$0xff]  ;;  %v146_v32 = vunpack.c.l.b16 %v89_v26 }
  0x1c   :  { %299 = vmatpush.bf16.msra.mxu0 %v687_v6  ;;  %v88_v24 = vld [vmem:[#allocation2] sm:$0xff]  ;;  %v699_v25 = vld [vmem:[#allocation5 + $0x88] sm:$0xff]  ;;  %v682_v30 = vld [vmem:[#allocation5] sm:$0xff] }
  0x1d   :  { %312 = vmatpush.bf16.msra.mxu1 %v695_v7  ;;  %v144_v28 = vunpack.c.l.b16 %v88_v24  ;;  %v145_v29 = vunpack.c.h.b16 %v88_v24  ;;  %v690_v31 = vld [vmem:[#allocation5 + $0x40] sm:$0xff]  ;;  %v149_v36 = vpack.c.b16 %v146_v32, %v146_v32  ;;  %v708_v37 = vld [vmem:[#allocation7 + $0x10] sm:$0xff]  ;;  %v707_v38 = vld [vmem:[#allocation7 + $0x8] sm:$0xff] }
  0x1e   :  { %325 = vmatpush.bf16.msra.mxu2 %v703_v8  ;;  %v698_v33 = vld [vmem:[#allocation5 + $0x80] sm:$0xff]  ;;  %v721_v40 = vld [vmem:[#allocation8 + $0x38] sm:$0xff]  ;;  %v720_v41 = vld [vmem:[#allocation8 + $0x30] sm:$0xff] }
  0x1f   :  { %408 = vmatpush.bf16.msra.mxu3 %v711_v17  ;;  %v147_v34 = vpack.c.b16 %v144_v28, %v144_v28  ;;  %v148_v35 = vpack.c.b16 %v145_v29, %v145_v29  ;;  %v706_v39 = vld [vmem:[#allocation7] sm:$0xff]  ;;  %v719_v42 = vld [vmem:[#allocation8 + $0x28] sm:$0xff]  ;;  %v729_v44 = vld [vmem:[%s933_s2] ss:$0 sm:$0xff] }
  0x20   :  { %300 = vmatpush.bf16.msra.mxu0 %v686_v10  ;;  %v718_v43 = vld [vmem:[#allocation8 + $0x20] sm:$0xff]  ;;  %v717_v45 = vld [vmem:[#allocation8 + $0x18] sm:$0xff]  ;;  %v716_v49 = vld [vmem:[#allocation8 + $0x10] sm:$0xff] }
  0x21   :  { %313 = vmatpush.bf16.msra.mxu1 %v694_v11  ;;  %v715_v58 = vld [vmem:[#allocation8 + $0x8] sm:$0xff]  ;;  %v714_v59 = vld [vmem:[#allocation8] sm:$0xff]  ;;  %v730_v60 = vld [vmem:[%s935_s4] ss:$0 sm:$0xff] }
  0x22   :  { %326 = vmatpush.bf16.msra.mxu2 %v702_v12  ;;  %v731_v2 = vld [vmem:[%s937_s6] ss:$0 sm:$0xff] }
  0x23   :  { %409 = vmatpush.bf16.msra.mxu3 %v710_v21 }
  0x24   :  { %301 = vmatpush.bf16.msra.mxu0 %v685_v14 }
  0x25   :  { %314 = vmatpush.bf16.msra.mxu1 %v693_v15 }
  0x26   :  { %327 = vmatpush.bf16.msra.mxu2 %v701_v16 }
  0x27   :  { %410 = vmatpush.bf16.msra.mxu3 %v709_v27 }
  0x28   :  { %302 = vmatpush.bf16.msra.mxu0 %v684_v18 }
  0x29   :  { %315 = vmatpush.bf16.msra.mxu1 %v692_v19 }
  0x2a   :  { %328 = vmatpush.bf16.msra.mxu2 %v700_v20 }
  0x2b   :  { %411 = vmatpush.bf16.msra.mxu3 %v708_v37 }
  0x2c   :  { %303 = vmatpush.bf16.msra.mxu0 %v683_v22 }
  0x2d   :  { %316 = vmatpush.bf16.msra.mxu1 %v691_v23 }
  0x2e   :  { %329 = vmatpush.bf16.msra.mxu2 %v699_v25 }
  0x2f   :  { %412 = vmatpush.bf16.msra.mxu3 %v707_v38 }
  0x30   :  { %304 = vmatpush.bf16.msra.mxu0 %v682_v30 }
  0x31   :  { %317 = vmatpush.bf16.msra.mxu1 %v690_v31 }
  0x32   :  { %330 = vmatpush.bf16.msra.mxu2 %v698_v33 }
  0x33   :  { %305 = vmatmul.bf16.vlgmr.msra.gmra.mxu0 %v147_v34  ;;  %413 = vmatpush.bf16.msra.mxu3 %v706_v39 }
  0x34   :  { %318 = vmatmul.bf16.vlgmr.msra.gmra.mxu1 %v148_v35  ;;  %489 = vmatpush.bf16.msrb.mxu0 %v721_v40 }
  0x35   :  { %331 = vmatmul.bf16.vlgmr.msra.gmra.mxu2 %v149_v36 }
  0x38   :  { %490 = vmatpush.bf16.msrb.mxu0 %v720_v41 }
  0x3c   :  { %491 = vmatpush.bf16.msrb.mxu0 %v719_v42 }
  0x40   :  { %492 = vmatpush.bf16.msrb.mxu0 %v718_v43 }
  0x44   :  { %493 = vmatpush.bf16.msrb.mxu0 %v717_v45 }
  0x48   :  { %494 = vmatpush.bf16.msrb.mxu0 %v716_v49 }
  0x4c   :  { %495 = vmatpush.bf16.msrb.mxu0 %v715_v58 }
  0x50   :  { %496 = vmatpush.bf16.msrb.mxu0 %v714_v59 }
  0xb0   :  { %v306_v46 = vpop.f32.mrf.mxu0 }
  0xb1   :  { %v319_v47 = vpop.f32.mrf.mxu1  ;;  %v307_v48 = vadd.f32 %v729_v44, %v306_v46 }
  0xb3   :  { %v320_v50 = vadd.f32 %v319_v47, %v307_v48 }
  0xb8   :  { %v332_v51 = vpop.f32.mrf.mxu2  ;;  %v308_v53 = vpop.f32.mrf.mxu0 }
  0xb9   :  { %v333_v52 = vadd.f32 %v332_v51, %v320_v50  ;;  %v321_v54 = vpop.f32.mrf.mxu1 }
  0xbb   :  { %v336_v55 = vmax.f32 %v333_v52, 0.0 }
  0xbd   :  { %v337_v56 = vpack.c.bf16 %v336_v55, %v336_v55 }
  0xbf   :  { %414 = vmatmul.bf16.vlgmr.msra.gmra.mxu3 %v337_v56 }
  0xc0   :  { %v334_v57 = vpop.f32.mrf.mxu2 }
 0x142   :  { %v415_v61 = vpop.f32.mrf.mxu3 }
 0x143   :  { %v416_v62 = vadd.f32 %v730_v60, %v415_v61 }
 0x145   :  { %v419_v63 = vmax.f32 %v416_v62, 0.0 }
 0x147   :  { %v420_v0 = vpack.c.bf16 %v419_v63, %v419_v63 }
 0x149   :  { %497 = vmatmul.bf16.vlgmr.msrb.gmra.mxu0 %v420_v0 }
 0x14a   :  { %v417_v1 = vpop.f32.mrf.mxu3 }
 0x1c6   :  { %v498_v3 = vpop.f32.mrf.mxu0 }
 0x1c7   :  { %v499_v4 = vadd.f32 %v731_v2, %v498_v3 }
 0x1c9   :  { %502 = vst [vmem:[#allocation10] sm:$0xff] %v499_v4 }
 0x1ca   :  { %513 = dma.vmem_to_hbm [thread:$0]  %s509_s25, 128, %s511_s28, [#allocation4]  }
 0x1ce   :  { %v500_v5 = vpop.f32.mrf.mxu0 }
 0x1cf   :  { %858 = dma.done.wait [#allocation4], 128  }
 0x1d0   :  { %859 = vsyncadd [#allocation4], 4294967168 }
 0x1d1   :  { %518 = vsyncpa [#allocation3], 1 }
 0x1d2   :  { %519 = vsyncpa [#allocation6], 1 }
 0x1d3   :  { %520 = vsyncpa [#allocation9], 1 }
 0x1d4   :  { %521 = vsyncpa [#allocation4], 1 }

</bundles_post_ra>
